<compile_context>
chip_gen: v6e
topology: v6e:2x2x1
jax: 0.10.0
libtpu: 0.0.40
codegen_flags: <defaults>
</compile_context>

<pallas_src>
import functools

import jax
import jax.numpy as jnp
from jax.experimental import pallas as pl
from jax.experimental.pallas import tpu as pltpu


# ---- Pallas kernel -----------------------------------------------------------
def rmsnorm_kernel(x_ref, w_ref, o_ref, *, eps):
  # x_ref: (TR, H) row tile, w_ref: (1, H) resident weight row, o_ref: (TR, H)
  x = x_ref[...].astype(jnp.float32)                 # x.float()
  ms = jnp.mean(x * x, axis=-1, keepdims=True)       # mean over hidden dim (XLU)
  inv = jax.lax.rsqrt(ms + eps)                      # rsqrt on the EUP
  normed = (x * inv).astype(o_ref.dtype)             # .type_as(x) first ...
  o_ref[...] = normed * w_ref[...]                   # ... then * weight


# ---- tiling heuristics --------------------------------------------------------
def _round_down(v, m):
  return (v // m) * m


def _round_up(v, m):
  return ((v + m - 1) // m) * m


def _pick_row_tile(n_rows, hidden, itemsize, vmem_budget_bytes, target_buf_bytes):
  """Pick the row-tile size from a VMEM budget.

  Per-row VMEM cost of the pipeline:
    input  : 2 double-buffered tiles of hidden*itemsize
    output : 2 double-buffered tiles of hidden*itemsize
    kernel : ~2 f32 tile-sized intermediates (upcast, x*x / normed)
  """
  bytes_per_row = 4 * hidden * itemsize + 2 * hidden * 4
  tr_budget = max(8, vmem_budget_bytes // bytes_per_row)
  # Aim each single buffer at ~target_buf_bytes (1-4 MiB pipeline sweet spot).
  tr_target = max(8, target_buf_bytes // (hidden * max(itemsize, 4)))
  tr = min(tr_budget, tr_target, n_rows)

  if tr < n_rows:
    # (8,128) block constraint: row tile must be a multiple of 8 unless it is
    # the full row extent; use 16 so bf16 sublane packing stays clean.
    tr = _round_down(tr, 16) if tr >= 16 else 8

  # Keep the grid >= 2 steps so v7x's two TensorCores both get work
  # (the row axis is marked "parallel" and gets sharded across cores).
  if tr >= n_rows and n_rows > 16:
    tr = _round_up(pl.cdiv(n_rows, 2), 16)

  return min(tr, n_rows)


# ---- wrapper -----------------------------------------------------------------
def llama4_rmsnorm(x, weight, eps=1e-5, *,
                   vmem_budget_bytes=32 << 20,     # safe on v5e/v6e/v7x
                   target_buf_bytes=4 << 20):
  """Llama4TextRMSNorm forward.  x: (..., H), weight: (H,)."""
  orig_shape = x.shape
  H = orig_shape[-1]
  xf = x.reshape(-1, H)                              # fold batch/seq into rows
  N = xf.shape[0]

  itemsize = jnp.dtype(x.dtype).itemsize
  tr = _pick_row_tile(N, H, itemsize, vmem_budget_bytes, target_buf_bytes)
  grid = (pl.cdiv(N, tr),)

  # Scoped-VMEM limit sized to the actual estimated usage with 1.5x headroom,
  # clamped to [16 MiB, 48 MiB] (48 MiB < v7x's 64 MiB physical VMEM).
  est = tr * H * (4 * itemsize + 2 * 4) + 2 * H * itemsize
  vmem_limit = int(min(48 << 20, max(16 << 20, est * 3 // 2 + (1 << 20))))

  out = pl.pallas_call(
      functools.partial(rmsnorm_kernel, eps=eps),
      out_shape=jax.ShapeDtypeStruct((N, H), x.dtype),
      grid_spec=pltpu.PrefetchScalarGridSpec(
          num_scalar_prefetch=0,
          grid=grid,
          in_specs=[
              # Full-H lane-dense row tile; never tile H (single-pass XLU
              # reduction, unmasked vst on the output).
              pl.BlockSpec((tr, H), lambda i: (i, 0)),
              pl.BlockSpec((1, H), lambda i: (0, 0)),   # weight row, resident
          ],
          out_specs=pl.BlockSpec((tr, H), lambda i: (i, 0)),
      ),
      compiler_params=pltpu.CompilerParams(
          dimension_semantics=("parallel",),           # rows are independent
          vmem_limit_bytes=vmem_limit,
      ),
  )(xf, weight.reshape(1, H))

  return out.reshape(orig_shape)


# ---- pure-JAX reference (mirrors the PyTorch module exactly) ------------------
def reference(x, weight, eps=1e-5):
  xf = x.astype(jnp.float32)
  ms = jnp.mean(xf * xf, axis=-1, keepdims=True)
  normed = (xf * jax.lax.rsqrt(ms + eps)).astype(x.dtype)   # type_as(x)
  return normed * weight


# ---- main --------------------------------------------------------------------
if __name__ == "__main__":
  B, S, H = 2, 64, 256          # small test; lane-dense hidden (multiple of 128)
  EPS = 1e-5                    # matches the PyTorch module default

  key = jax.random.PRNGKey(0)
  kx, kw = jax.random.split(key, 2)

  # float32 test (tight tolerance)
  x_f32 = jax.random.normal(kx, (B, S, H), jnp.float32)
  w_f32 = 1.0 + 0.1 * jax.random.normal(kw, (H,), jnp.float32)

  out_f32 = jax.block_until_ready(llama4_rmsnorm(x_f32, w_f32, EPS))
  ref_f32 = reference(x_f32, w_f32, EPS)
  err_f32 = float(jnp.max(jnp.abs(out_f32 - ref_f32)))
  assert jnp.allclose(out_f32, ref_f32, atol=1e-5, rtol=1e-5), \
      f"f32 max abs err {err_f32}"

  # bfloat16 test (exercises the .float() -> compute -> .type_as(x) path)
  x_bf16 = x_f32.astype(jnp.bfloat16)
  w_bf16 = w_f32.astype(jnp.bfloat16)
  out_bf16 = jax.block_until_ready(llama4_rmsnorm(x_bf16, w_bf16, EPS))
  ref_bf16 = reference(x_bf16, w_bf16, EPS)
  err_bf16 = float(jnp.max(jnp.abs(
      out_bf16.astype(jnp.float32) - ref_bf16.astype(jnp.float32))))
  assert jnp.allclose(out_bf16.astype(jnp.float32),
                      ref_bf16.astype(jnp.float32),
                      atol=2e-2, rtol=2e-2), f"bf16 max abs err {err_bf16}"

  print("KERNEL_OK")
</pallas_src>

<mosaic_0001>
module attributes {stable_mosaic.version = 11 : i64} {
  func.func @rmsnorm_kernel(%arg0: i32, %arg1: memref<64x256xf32, #tpu.memory_space<vmem>>, %arg2: memref<1x256xf32, #tpu.memory_space<vmem>>, %arg3: memref<64x256xf32, #tpu.memory_space<vmem>>) attributes {dimension_semantics = [#tpu.dimension_semantics<parallel>], iteration_bounds = array<i64: 2>, scalar_prefetch = 0 : i64, scratch_operands = 0 : i64, tpu.core_type = #tpu.core_type<tc>, window_params = [{transform_indices = @transform_0, window_bounds = array<i64: 64, 256>}, {pipeline_mode = #tpu.pipeline_mode<synchronous>, transform_indices = @transform_1, window_bounds = array<i64: 1, 256>}, {transform_indices = @transform_2, window_bounds = array<i64: 64, 256>}]} {
    %c0 = arith.constant 0 : index
    %c0_0 = arith.constant 0 : index
    %0 = vector.load %arg1[%c0, %c0_0] : memref<64x256xf32, #tpu.memory_space<vmem>>, vector<64x256xf32>
    %1 = arith.mulf %0, %0 : vector<64x256xf32>
    %cst = arith.constant dense<0.000000e+00> : vector<64xf32>
    %2 = vector.multi_reduction <add>, %1, %cst [1] : vector<64x256xf32> to vector<64xf32>
    %3 = vector.shape_cast %2 : vector<64xf32> to vector<64x1xf32>
    %cst_1 = arith.constant 2.560000e+02 : f32
    %4 = vector.broadcast %cst_1 : f32 to vector<64x1xf32>
    %5 = arith.divf %3, %4 : vector<64x1xf32>
    %cst_2 = arith.constant 9.99999974E-6 : f32
    %6 = vector.broadcast %cst_2 : f32 to vector<64x1xf32>
    %7 = arith.addf %5, %6 : vector<64x1xf32>
    %8 = math.rsqrt %7 : vector<64x1xf32>
    %9 = vector.broadcast %8 : vector<64x1xf32> to vector<64x256xf32>
    %10 = arith.mulf %0, %9 : vector<64x256xf32>
    %c0_3 = arith.constant 0 : index
    %c0_4 = arith.constant 0 : index
    %11 = vector.load %arg2[%c0_3, %c0_4] : memref<1x256xf32, #tpu.memory_space<vmem>>, vector<1x256xf32>
    %12 = vector.broadcast %11 : vector<1x256xf32> to vector<64x256xf32>
    %13 = arith.mulf %10, %12 : vector<64x256xf32>
    %c0_5 = arith.constant 0 : index
    %c0_6 = arith.constant 0 : index
    %14 = vector.load %arg3[%c0_5, %c0_6] : memref<64x256xf32, #tpu.memory_space<vmem>>, vector<64x256xf32>
    tpu.vector_store %arg3[%c0_5, %c0_6], %13 {strides = array<i32>} : memref<64x256xf32, #tpu.memory_space<vmem>>, vector<64x256xf32>,
    return
  }
  func.func @transform_0(%arg0: i32) -> (i32, i32) {
    %c0_i32 = arith.constant 0 : i32
    %c0_i32_0 = arith.constant 0 : i32
    return %arg0, %c0_i32 : i32, i32
  }
  func.func @transform_1(%arg0: i32) -> (i32, i32) {
    %c0_i32 = arith.constant 0 : i32
    %c0_i32_0 = arith.constant 0 : i32
    %c0_i32_1 = arith.constant 0 : i32
    return %c0_i32, %c0_i32_0 : i32, i32
  }
  func.func @transform_2(%arg0: i32) -> (i32, i32) {
    %c0_i32 = arith.constant 0 : i32
    %c0_i32_0 = arith.constant 0 : i32
    return %arg0, %c0_i32 : i32, i32
  }
}

</mosaic_0001>

<bundles_post_ra>
// kernel: tpu_custom_call.1
= control target key start
LH: loop header
LB: loop body
LE: loop exit
PB: predicated region body
PF: predicated region fallthrough
CT: control target
= control target key end

     0   :  { %7 = vsyncpa [#allocation3], 0  ;;  %s964_s0 = inlined_call_operand.hbm [shape: f32[128,256], index: 0, kind: input, shape index: {}]   ;;  %s965_s1 = inlined_call_operand.hbm [shape: f32[1,256], index: 1, kind: input, shape index: {}]   ;;  %s966_s2 = inlined_call_operand.hbm [shape: f32[128,256], index: 2, kind: output, shape index: {}]  }
   0x1   :  { %9 = vsyncpa [#allocation3 + $0x1], 0 }
   0x2   :  { %10 = vsyncpa [#allocation6], 0 }
   0x3   :  { %11 = vsyncpa [#allocation4], 0 }
   0x4   :  { %13 = vsyncpa [#allocation4 + $0x1], 0  ;;  %s662_s9 = smov 0   ;;  %s664_s10 = smov 0  }
   0x5   :  { %s666_s11 = smov 0   ;;  %s668_s12 = smov 0  }
   0x6 LB: > { %s683_s13 = sadd.s32 4294967295, %s638_s12   ;;  %s417_s14 = sadd.s32 4294967294, %s638_s12   ;;  %s638_s12 = sphi %s668_s12, %s989_s12   ;;  %s634_s11 = sphi %s666_s11, %s988_s11   ;;  %s630_s10 = sphi %s664_s10, %s987_s10   ;;  %s626_s9 = sphi %s662_s9, %s986_s9  }
   0x7   : > { %s687_s15 = sadd.s32 1, %s638_s12   ;;  %s26_s16 = sadd.s32 1, %s634_s11 }
   0x8   : > { %s23_s17 = ssub.s32 %s638_s12, %s687_s15  ;;  %p33_p0 = scmp.ne.s32.totalorder %s634_s11, %s630_s10 }
   0x9   : > { %p24_p1 = scmp.eq.s32.totalorder %s23_s17, 0  ;;  %p34_p2 = scmp.eq.s32.totalorder %s638_s12, 0 }
   0xa   : > { %p39_p3 = scmp.ne.s32.totalorder %s630_s10, %s626_s9  ;;  %p967_p4 = scmp.eq.s32.totalorder %s683_s13, 0 }
   0xb   : > { %s699_s18 = scalar_select %p24_p1, %s634_s11, %s26_s16  }
   0xc   : > { %p701_p5 = por %p34_p2, %p33_p0  ;;  %p707_p6 = por %p967_p4, %p39_p3 }
   0xd   : > { %p84_p7 = scmp.eq.s32.totalorder %s683_s13, 1  ;;  %p90_p8 = scmp.eq.s32.totalorder %s417_s14, 1 }
   0xe   : > { %s972_s20 = scalar_select %p707_p6, 1, 0 }
   0xf   : > { %p418_p9 = scmp.ge.s32.totalorder %s638_s12, 1  ;;  %p97_p10 = scmp.lt.s32.totalorder %s638_s12, 3 }
  0x10   : > { %p714_p11 = por %p84_p7, %p33_p0  ;;  %p718_p12 = por %p90_p8, %p39_p3 }
  0x11   : > { %p722_p13 = pnand %p418_p9, %p97_p10  ;;  %s640_s24 = smov [#allocation5]  }
  0x12   : > { %s973_s21 = scalar_select %p714_p11, 1, 0 }
  0x13   : > { %s974_s22 = scalar_select %p718_p12, 1, 0 }
  0x14   : > { %s975_s23 = scalar_select %p722_p13, 1, 0 }
  0x15   : > { %p447_p2 = pneg %p722_p13  ;;  %s110_s25 = sshll.u32 %s640_s24, 4  ;;  %s111_s25 = int_to_ptr.vmem [resolvable:$true] %s110_s25 }
  0x16   : > { %p460_p4 = scmp.lt.s32.totalorder %s638_s12, 2  ;;  %p976_p0 = scmp.eq.s32.totalorder %s683_s13, 0 }
  0x17   : > { %s121_s27 = sand.u32 1, %s634_s11   ;;  %s527_s30 = scalar_lea.vmem %s111_s25, 32 }
  0x18   : > { %p732_p7 = pnand %p447_p2, %p976_p0  ;;  %p739_p3 = pnand %p460_p4, %p701_p5 }
  0x19   : > { %s421_s29 = sshll.u32 %s121_s27, 7  ;;  %p528_p9 = scmp.ne.s32.totalorder %s111_s25, %s527_s30 }
  0x1a   : > { %p518_p8 = pneg %p732_p7  ;;  %p535_p12 = scmp.lt.s32.totalorder %s111_s25, %s111_s25 }
  0x1b   : > { %p536_p11 = scmp.lt.s32.totalorder %s527_s30, %s527_s30 }
  0x1c   : > { %p530_p10 = pnand %p528_p9, %p518_p8 }
  0x1d   : > { %p537_p2 = por %p536_p11, %p535_p12 }
  0x1e   : > { %p531_p1 = pneg %p530_p10 }
  0x20   : > { %p538_p0 = pnand %p537_p2, %p531_p1 }
  0x22   : > { %541 = shalt.err (!%p538_p0)
}
  0x23   : > { %450 = dma.hbm_to_vmem [thread:$0]  (!%p732_p7), %s965_s1, 32, %s111_s25, [#allocation6]  }
  0x24   : > { %s436_s5 = sshll.u32 %s638_s12, 11  ;;  %s125_s6 = scalar_lea.vmem [#allocation2], %s421_s29 }
  0x25   : > { %s133_s7 = sshll.u32 %s125_s6, 4  ;;  %s754_s16 = scalar_lea.hbm %s964_s0, %s436_s5  ;;  %s756_s7 = int_to_ptr.vmem [resolvable:$true] %s133_s7 }
  0x26   : > { %s758_s17 = scalar_lea.sflag [#allocation3], %s121_s27  ;;  %s542_s19 = scalar_lea.hbm %s754_s16, 2048 }
  0x27   : > { %p543_p4 = scmp.ne.s32.totalorder %s754_s16, %s542_s19  ;;  %p544_p5 = pneg %p739_p3 }
  0x28   : > { %s547_s26 = scalar_lea.hbm %s964_s0, 4096  ;;  %p548_p1 = scmp.lt.s32.totalorder %s754_s16, %s964_s0 }
  0x29   : > { %p545_p11 = pnand %p544_p5, %p543_p4  ;;  %p549_p7 = scmp.lt.s32.totalorder %s547_s26, %s542_s19 }
  0x2b   : > { %p546_p12 = pneg %p545_p11  ;;  %p550_p8 = por %p549_p7, %p548_p1 }
  0x2d   : > { %p551_p9 = pnand %p550_p8, %p546_p12 }
  0x2f   : > { %554 = shalt.err (!%p551_p9)
}
  0x30   : > { %s555_s27 = scalar_lea.vmem %s756_s7, 2048  ;;  %s641_s3 = smov [#allocation2]  }
  0x31   : > { %p556_p10 = scmp.ne.s32.totalorder %s756_s7, %s555_s27  ;;  %s560_s4 = sshll.u32 %s641_s3, 4  ;;  %s561_s4 = int_to_ptr.vmem [resolvable:$false] %s560_s4 }
  0x32   : > { %s562_s5 = scalar_lea.vmem %s561_s4, 4096  ;;  %p563_p4 = scmp.lt.s32.totalorder %s756_s7, %s561_s4 }
  0x33   : > { %p558_p2 = pnand %p556_p10, %p544_p5  ;;  %p564_p11 = scmp.lt.s32.totalorder %s562_s5, %s555_s27 }
  0x35   : > { %p559_p0 = pneg %p558_p2  ;;  %p565_p6 = por %p564_p11, %p563_p4 }
  0x37   : > { %p566_p13 = pnand %p565_p6, %p559_p0 }
  0x39   : > { %569 = shalt.err (!%p566_p13)
}
  0x3a   : > { %s642_s6 = smov 256   ;;  %s643_s8 = smov 16  }
  0x3b   : > { %454 = dma.hbm_to_vmem [thread:$0]  (!%p739_p3), %s754_s16, 2048, %s756_s7, %s758_s17, %s642_s6, %s642_s6, %s643_s8  }
  0x3c   : > { %p979_p5 = scmp.ne.s32.totalorder %s975_s23, 0 }
  0x3d   : > { %s782_s14 = sand.u32 (!%p979_p5), 1, %s630_s10   ;;  %p980_p6 = scmp.ne.s32.totalorder (!%p979_p5), %s972_s20, 0 }
  0x3e   : > { %145 = sbr.rel (%p979_p5) target bundleno = 263 (0x107), region = 28  ;;  %s426_s19 = sshll.u32 (!%p979_p5), %s782_s14, 7 }
  0x3f   : > { %s148_s24 = scalar_lea.sflag (!%p979_p5), [#allocation3], %s782_s14  ;;  %s788_s25 = scalar_lea.vmem (!%p979_p5), [#allocation2], %s426_s19 }
  0x43   : > { %613 = dma.done.wait (%p980_p6), %s148_s24, 2048  }
  0x44   : > { %615 = vsyncadd (%p980_p6), %s148_s24, 4294965248  ;;  %p981_p13 = scmp.eq.s32.totalorder %s683_s13, 0 }
  0x46   : > { %617 = dma.done.wait (%p981_p13), [#allocation6], 32   ;;  %p982_p3 = pmov %p981_p13 }
  0x47   : > { %v799_v0 = vld [vmem:[%s788_s25 + $0x20] sm:$0xff]  ;;  %v802_v1 = vld [vmem:[%s788_s25 + $0x28] sm:$0xff]  ;;  %v817_v7 = vld [vmem:[%s788_s25 + $0x30] sm:$0xff]  ;;  %v277_v47 = vlaneseq  ;;  %s884_s20 = scalar_lea.vmem [#allocation7], %s426_s19  ;;  %s438_s23 = sshll.u32 %s683_s13, 11 }
  0x48   : > { %619 = vsyncadd (%p982_p3), [#allocation6], 4294967264  ;;  %v805_v2 = vld [vmem:[%s788_s25] sm:$0xff]  ;;  %v198_v3 = vmul.f32 %v799_v0, %v799_v0  ;;  %v199_v4 = vmul.f32 %v802_v1, %v802_v1  ;;  %v812_v5 = vld [vmem:[%s788_s25 + $0x8] sm:$0xff]  ;;  %v200_v10 = vmul.f32 %v817_v7, %v817_v7  ;;  %s334_s28 = sshll.u32 %s884_s20, 4  ;;  %s915_s16 = scalar_lea.hbm %s966_s2, %s438_s23  ;;  %s917_s28 = int_to_ptr.vmem [resolvable:$true] %s334_s28 }
  0x49   : > { %v194_v6 = vmul.f32 %v805_v2, %v805_v2  ;;  %v820_v8 = vld [vmem:[%s788_s25 + $0x38] sm:$0xff]  ;;  %v195_v9 = vmul.f32 %v812_v5, %v812_v5  ;;  %v829_v12 = vld [vmem:[%s788_s25 + $0x10] sm:$0xff]  ;;  %v845_v19 = vld [vmem:[%s788_s25 + $0x40] sm:$0xff]  ;;  %v278_v54 = vshrl.u32 %v277_v47, 7  ;;  %s320_s17 = scalar_lea.sflag [#allocation4], %s782_s14  ;;  %s570_s26 = scalar_lea.vmem %s917_s28, 2048 }
  0x4a   : > { %v201_v11 = vmul.f32 %v820_v8, %v820_v8  ;;  %v832_v13 = vld [vmem:[%s788_s25 + $0x18] sm:$0xff]  ;;  %v835_v14 = vld [vmem:[%s788_s25 + $0x50] sm:$0xff]  ;;  %v216_v15 = vadd.f32 %v199_v4, %v198_v3  ;;  %v196_v16 = vmul.f32 %v829_v12, %v829_v12  ;;  %v848_v20 = vld [vmem:[%s788_s25 + $0x48] sm:$0xff]  ;;  %v202_v26 = vmul.f32 %v845_v19, %v845_v19  ;;  %p571_p12 = scmp.ne.s32.totalorder %s917_s28, %s570_s26  ;;  %p983_p1 = scmp.ne.s32.totalorder %s973_s21, 0 }
  0x4b   : > { %v197_v17 = vmul.f32 %v832_v13, %v832_v13  ;;  %v842_v18 = vld [vmem:[%s788_s25 + $0x58] sm:$0xff]  ;;  %v210_v21 = vadd.f32 %v195_v9, %v194_v6  ;;  %v204_v23 = vmul.f32 %v835_v14, %v835_v14  ;;  %v203_v27 = vmul.f32 %v848_v20, %v848_v20  ;;  %v859_v28 = vld [vmem:[%s788_s25 + $0x70] sm:$0xff]  ;;  %v865_v30 = vld [vmem:[%s788_s25 + $0x60] sm:$0xff]  ;;  %s644_s29 = smov [#allocation7]  }
  0x4c   : > { %217 = vadd.xlane.f32.xlu1 %v216_v15  ;;  %v219_v22 = vadd.f32 %v201_v11, %v200_v10  ;;  %v205_v24 = vmul.f32 %v842_v18, %v842_v18  ;;  %v862_v29 = vld [vmem:[%s788_s25 + $0x78] sm:$0xff]  ;;  %v868_v31 = vld [vmem:[%s788_s25 + $0x68] sm:$0xff]  ;;  %v208_v33 = vmul.f32 %v859_v28, %v859_v28  ;;  %v206_v36 = vmul.f32 %v865_v30, %v865_v30  ;;  %v275_v4 = vld [vmem:[#allocation5] sm:$0x3]  ;;  %p572_p7 = pnand %p571_p12, %p983_p1  ;;  %s574_s30 = sshll.u32 %s644_s29, 4  ;;  %s575_s30 = int_to_ptr.vmem [resolvable:$false] %s574_s30 }
  0x4d   : > { %211 = vadd.xlane.f32.xlu0 %v210_v21  ;;  %v213_v25 = vadd.f32 %v197_v17, %v196_v16  ;;  %v209_v34 = vmul.f32 %v862_v29, %v862_v29  ;;  %v222_v35 = vadd.f32 %v203_v27, %v202_v26  ;;  %v207_v37 = vmul.f32 %v868_v31, %v868_v31  ;;  %s576_s27 = scalar_lea.vmem %s575_s30, 4096  ;;  %p577_p9 = scmp.lt.s32.totalorder %s917_s28, %s575_s30 }
  0x4e   : > { %v225_v32 = vadd.f32 %v205_v24, %v204_v23  ;;  %v279_v61 = vsub.s32 0, %v278_v54  ;;  %v283_v62 = vsub.s32 1, %v278_v54  ;;  %p573_p8 = pneg %p572_p7  ;;  %p578_p10 = scmp.lt.s32.totalorder %s576_s27, %s570_s26 }
  0x4f   : > { %v231_v38 = vadd.f32 %v209_v34, %v208_v33  ;;  %v228_v39 = vadd.f32 %v207_v37, %v206_v36 }
  0x50   : > { %220 = vadd.xlane.f32.xlu1 %v219_v22  ;;  %v280_v11 = vrot.slane %v275_v4, %v279_v61  ;;  %v284_v15 = vrot.slane %v275_v4, %v283_v62  ;;  %p579_p2 = por %p578_p10, %p577_p9 }
  0x51   : > { %214 = vadd.xlane.f32.xlu0 %v213_v25 }
  0x52   : > { %p580_p0 = pnand %p579_p2, %p573_p8 }
  0x54   : > { %226 = vadd.xlane.f32.xlu1 %v225_v32 }
  0x55   : > { %223 = vadd.xlane.f32.xlu0 %v222_v35 }
  0x58   : > { %232 = vadd.xlane.f32.xlu1 %v231_v38 }
  0x59   : > { %229 = vadd.xlane.f32.xlu0 %v228_v39 }
  0xd5   : > { %v218_v40 = vpop.xlane.xlu1 %217 }
  0xd6   : > { %v237_v41 = vmul.f32 0.00390625, %v218_v40  ;;  %v212_v42 = vpop.xlane.xlu0 %211 }
  0xd7   : > { %v235_v43 = vmul.f32 0.00390625, %v212_v42 }
  0xd8   : > { %v245_v44 = vadd.f32 1e-05, %v237_v41 }
  0xd9   : > { %v243_v45 = vadd.f32 1e-05, %v235_v43  ;;  %v221_v46 = vpop.xlane.xlu1 %220 }
  0xda   : > { %500 = vrsqrt.f32 %v245_v44  ;;  %v238_v48 = vmul.f32 0.00390625, %v221_v46  ;;  %v215_v49 = vpop.xlane.xlu0 %214 }
  0xdb   : > { %502 = vrsqrt.f32 %v243_v45  ;;  %v236_v50 = vmul.f32 0.00390625, %v215_v49 }
  0xdc   : > { %v246_v51 = vadd.f32 1e-05, %v238_v48 }
  0xdd   : > { %v244_v52 = vadd.f32 1e-05, %v236_v50  ;;  %v227_v53 = vpop.xlane.xlu1 %226 }
  0xde   : > { %504 = vrsqrt.f32 %v246_v51  ;;  %v240_v55 = vmul.f32 0.00390625, %v227_v53  ;;  %v224_v56 = vpop.xlane.xlu0 %223 }
  0xdf   : > { %506 = vrsqrt.f32 %v244_v52  ;;  %v239_v57 = vmul.f32 0.00390625, %v224_v56 }
  0xe0   : > { %v248_v58 = vadd.f32 1e-05, %v240_v55 }
  0xe1   : > { %v247_v59 = vadd.f32 1e-05, %v239_v57  ;;  %v233_v60 = vpop.xlane.xlu1 %232 }
  0xe2   : > { %508 = vrsqrt.f32 %v248_v58  ;;  %v242_v63 = vmul.f32 0.00390625, %v233_v60  ;;  %v230_v3 = vpop.xlane.xlu0 %229 }
  0xe3   : > { %510 = vrsqrt.f32 %v247_v59  ;;  %v241_v6 = vmul.f32 0.00390625, %v230_v3 }
  0xe4   : > { %v250_v9 = vadd.f32 1e-05, %v242_v63 }
  0xe5   : > { %v249_v10 = vadd.f32 1e-05, %v241_v6 }
  0xe6   : > { %512 = vrsqrt.f32 %v250_v9 }
  0xe7   : > { %v501_v16 = vpop.eup %500  ;;  %514 = vrsqrt.f32 %v249_v10 }
  0xe8   : > { %v503_v17 = vpop.eup %502  ;;  %v263_v21 = vmul.f32 %v501_v16, %v799_v0  ;;  %v264_v22 = vmul.f32 %v501_v16, %v802_v1 }
  0xe9   : > { %v259_v23 = vmul.f32 %v503_v17, %v805_v2  ;;  %v260_v24 = vmul.f32 %v503_v17, %v812_v5 }
  0xea   : > { %v291_v25 = vmul.f32 %v280_v11, %v263_v21  ;;  %v292_v26 = vmul.f32 %v284_v15, %v264_v22 }
  0xeb   : > { %v505_v27 = vpop.eup %504  ;;  %v287_v32 = vmul.f32 %v280_v11, %v259_v23  ;;  %v288_v33 = vmul.f32 %v284_v15, %v260_v24 }
  0xec   : > { %v507_v34 = vpop.eup %506  ;;  %307 = vst [vmem:[%s884_s20 + $0x20] sm:$0xff] %v291_v25  ;;  %308 = vst [vmem:[%s884_s20 + $0x28] sm:$0xff] %v292_v26  ;;  %v265_v0 = vmul.f32 %v505_v27, %v817_v7  ;;  %v266_v1 = vmul.f32 %v505_v27, %v820_v8 }
  0xed   : > { %303 = vst [vmem:[%s884_s20] sm:$0xff] %v287_v32  ;;  %304 = vst [vmem:[%s884_s20 + $0x8] sm:$0xff] %v288_v33  ;;  %v261_v2 = vmul.f32 %v507_v34, %v829_v12  ;;  %v262_v5 = vmul.f32 %v507_v34, %v832_v13 }
  0xee   : > { %v293_v35 = vmul.f32 %v280_v11, %v265_v0  ;;  %v294_v36 = vmul.f32 %v284_v15, %v266_v1 }
  0xef   : > { %v509_v37 = vpop.eup %508  ;;  %v289_v38 = vmul.f32 %v280_v11, %v261_v2  ;;  %v290_v39 = vmul.f32 %v284_v15, %v262_v5 }
  0xf0   : > { %v511_v40 = vpop.eup %510  ;;  %309 = vst [vmem:[%s884_s20 + $0x30] sm:$0xff] %v293_v35  ;;  %310 = vst [vmem:[%s884_s20 + $0x38] sm:$0xff] %v294_v36  ;;  %v269_v7 = vmul.f32 %v509_v37, %v835_v14  ;;  %v270_v8 = vmul.f32 %v509_v37, %v842_v18 }
  0xf1   : > { %305 = vst [vmem:[%s884_s20 + $0x10] sm:$0xff] %v289_v38  ;;  %306 = vst [vmem:[%s884_s20 + $0x18] sm:$0xff] %v290_v39  ;;  %v267_v12 = vmul.f32 %v511_v40, %v845_v19  ;;  %v268_v13 = vmul.f32 %v511_v40, %v848_v20 }
  0xf2   : > { %v297_v41 = vmul.f32 %v280_v11, %v269_v7  ;;  %v298_v42 = vmul.f32 %v284_v15, %v270_v8 }
  0xf3   : > { %v513_v43 = vpop.eup %512  ;;  %v295_v44 = vmul.f32 %v280_v11, %v267_v12  ;;  %v296_v45 = vmul.f32 %v284_v15, %v268_v13 }
  0xf4   : > { %v515_v46 = vpop.eup %514  ;;  %313 = vst [vmem:[%s884_s20 + $0x50] sm:$0xff] %v297_v41  ;;  %314 = vst [vmem:[%s884_s20 + $0x58] sm:$0xff] %v298_v42  ;;  %v273_v14 = vmul.f32 %v513_v43, %v859_v28  ;;  %v274_v18 = vmul.f32 %v513_v43, %v862_v29 }
  0xf5   : > { %311 = vst [vmem:[%s884_s20 + $0x40] sm:$0xff] %v295_v44  ;;  %312 = vst [vmem:[%s884_s20 + $0x48] sm:$0xff] %v296_v45  ;;  %v271_v19 = vmul.f32 %v515_v46, %v865_v30  ;;  %v272_v20 = vmul.f32 %v515_v46, %v868_v31 }
  0xf6   : > { %v301_v47 = vmul.f32 %v280_v11, %v273_v14  ;;  %v302_v48 = vmul.f32 %v284_v15, %v274_v18 }
  0xf7   : > { %v299_v28 = vmul.f32 %v280_v11, %v271_v19  ;;  %v300_v29 = vmul.f32 %v284_v15, %v272_v20 }
  0xf8   : > { %317 = vst [vmem:[%s884_s20 + $0x70] sm:$0xff] %v301_v47  ;;  %318 = vst [vmem:[%s884_s20 + $0x78] sm:$0xff] %v302_v48 }
  0xf9   : > { %315 = vst [vmem:[%s884_s20 + $0x60] sm:$0xff] %v299_v28  ;;  %316 = vst [vmem:[%s884_s20 + $0x68] sm:$0xff] %v300_v29 }
  0xfa   : > { %583 = shalt.err (!%p580_p0)
}
  0xfb   : > { %s584_s3 = scalar_lea.hbm %s915_s16, 2048  ;;  %s588_s6 = scalar_lea.hbm %s966_s2, 4096 }
  0xfc   : > { %p585_p4 = scmp.ne.s32.totalorder %s915_s16, %s584_s3  ;;  %p589_p6 = scmp.lt.s32.totalorder %s915_s16, %s966_s2 }
  0xfd   : > { %p590_p13 = scmp.lt.s32.totalorder %s588_s6, %s584_s3 }
  0xfe   : > { %p586_p11 = pnand %p585_p4, %p983_p1 }
  0xff   : > { %p591_p3 = por %p590_p13, %p589_p6 }
 0x100   : > { %p587_p5 = pneg %p586_p11 }
 0x102   : > { %p592_p12 = pnand %p591_p3, %p587_p5 }
 0x104   : > { %595 = shalt.err (!%p592_p12)
}
 0x105   : > { %s645_s24 = smov 256   ;;  %s646_s25 = smov 16  }
 0x106   : > { %445 = dma.vmem_to_hbm [thread:$0]  (%p983_p1), %s917_s28, 2048, %s915_s16, %s320_s17, %s645_s24, %s645_s24, %s646_s25  }
 0x107 PF: > { %s349_s20 = sand.u32 1, %s626_s9   ;;  %p984_p7 = scmp.ne.s32.totalorder %s974_s22, 0 }
 0x108   : > { %p985_p8 = scmp.ge.s32.totalorder %s638_s12, 2  ;;  %s350_s23 = scalar_lea.sflag [#allocation4], %s349_s20 }
 0x10a   : > { %p456_p9 = pnand %p985_p8, %p984_p7 }
 0x10c   : > { %p457_p10 = pneg %p456_p9 }
 0x10e   : > { %621 = dma.done.wait (%p457_p10), %s350_s23, 2048  }
 0x10f   : > { %623 = vsyncadd (%p457_p10), %s350_s23, 4294965248  ;;  %p16_p2 = scmp.ge.s32.totalorder %s687_s15, 4   ;;  %s986_s9 = smov %s630_s10 }
 0x110   : > { %s987_s10 = smov %s634_s11  ;;  %s988_s11 = smov %s699_s18 }
 0x111   : > { %s989_s12 = smov %s687_s15  ;;  %18 = sbr.rel (!%p16_p2) target bundleno = 6 (0x6), region = 77 }
 0x116   :  { %355 = vsyncpa [#allocation3], 1 }
 0x117   :  { %357 = vsyncpa [#allocation3 + $0x1], 1 }
 0x118   :  { %358 = vsyncpa [#allocation6], 1 }
 0x119   :  { %359 = vsyncpa [#allocation4], 1 }
 0x11a   :  { %361 = vsyncpa [#allocation4 + $0x1], 1 }

</bundles_post_ra>
